<compile_context>
chip_gen: v7x
topology: tpu7x:2x2x1
jax: 0.10.0
libtpu: 0.0.40
codegen_flags: <defaults>
</compile_context>

<pallas_src>
import functools

import jax
import jax.numpy as jnp
from jax.experimental import pallas as pl
from jax.experimental.pallas import tpu as pltpu

_LANE_TILE_CAP = 8192   # elements of the flattened node axis per block


def _round_up(x, m):
    return ((x + m - 1) // m) * m


def _lane_tile(p, h):
    """Tile along the flattened (lane) node axis.  `p` is a multiple of 128.
    Targets <= ~1 MiB per (H, tp) head block and <= _LANE_TILE_CAP lanes, so
    the outer "parallel" axis gets >= 2 tiles for large P (v7x megacore)."""
    cap = min(_LANE_TILE_CAP, max(128, ((1 << 20) // (h * 4)) // 128 * 128))
    if p <= cap:
        return p
    t = cap
    while p % t != 0:          # largest 128-multiple divisor of p that is <= cap
        t -= 128
    return t


def _batch_tile(b, tp):
    """Batch rows per block: the full batch when tiny, otherwise a multiple of
    8 sized so the (tb, tp) f32 block is ~2 MiB (HBM-streaming sweet spot)."""
    if b <= 8:
        return b
    target = max(8, (2 << 20) // (tp * 4))
    return max(8, (min(b, target) // 8) * 8)


def _fused_kernel(delta_ref, w_ref, adj_ref, out_ref, adjs_ref, *,
                  inv_tau, inv_heads, a):
    """Head-reduced 2-way gumbel-softmax + blend, in one pass.

    softmax([(l0+g0)/tau, (l1+g1)/tau])[0] == sigmoid(((l0+g0)-(l1+g1)) / tau)

    Grid = (P_tiles, B_tiles); the inner (batch) axis reuses the adjs scratch
    computed at batch_idx == 0, so the head reduction runs once per P tile.
    """
    @pl.when(pl.program_id(1) == 0)
    def _():
        p0 = jax.nn.sigmoid(delta_ref[...] * inv_tau)                    # (H, tp)
        adjs_ref[...] = (jnp.sum(w_ref[...] * p0, axis=0, keepdims=True)
                         * inv_heads)                                    # (1, tp)

    out_ref[...] = (a * adjs_ref[...]
                    + (1.0 - a) * adj_ref[...].astype(jnp.float32))      # (tb, tp)


def multi_network_generator(adj, matrix, weight, gumbels, *, a, tau=10.0):
    """adj: (B, N, N); matrix: (H, N, N, 2); weight: (H, N, N);
    gumbels: (H, N, N, 2) pre-sampled gumbel noise; a, tau static floats.
    Returns (B, N, N) float32."""
    H, N = weight.shape[0], weight.shape[1]
    B = adj.shape[0]
    P = N * N
    P_pad = _round_up(P, 128)            # lane-dense (unmasked) stores

    # Traced-only producers; allow_input_fusion lets XLA fuse them into the
    # pallas_call input path (no separately materialized `delta` pass).
    m = jnp.reshape(matrix, (H, P, 2)).astype(jnp.float32)
    g = jnp.reshape(gumbels, (H, P, 2)).astype(jnp.float32)
    delta = (m[..., 0] + g[..., 0]) - (m[..., 1] + g[..., 1])            # (H, P)
    w_flat = jnp.reshape(weight, (H, P)).astype(jnp.float32)
    adj_flat = jnp.reshape(adj, (B, P))

    if P_pad != P:
        pad = ((0, 0), (0, P_pad - P))
        delta = jnp.pad(delta, pad)      # sigmoid(0) * w=0 -> padded cols harmless
        w_flat = jnp.pad(w_flat, pad)
        adj_flat = jnp.pad(adj_flat, pad)

    tp = _lane_tile(P_pad, H)
    tb = _batch_tile(B, tp)

    # Double-buffered block footprint; blocks target ~2 MiB so the total stays
    # far below every generation's VMEM (incl. v7x's 64 MiB physical).
    block_bytes = 4 * (2 * 2 * H * tp        # delta + weight blocks
                       + 2 * 2 * tb * tp     # adj + out blocks
                       + tp)                 # resident adjs scratch
    vmem_limit = int(min(32 << 20, max(2 * block_bytes, 8 << 20)))

    # TODO(synk): add a head-reduction grid axis (accumulator pattern) if H
    #             ever grows so large that an (H, 128) block no longer fits.
    kernel = functools.partial(
        _fused_kernel,
        inv_tau=1.0 / float(tau),
        inv_heads=1.0 / float(H),
        a=float(a))

    out_flat = pl.pallas_call(
        kernel,
        out_shape=jax.ShapeDtypeStruct((B, P_pad), jnp.float32),
        grid=(P_pad // tp, pl.cdiv(B, tb)),            # P outer, batch inner
        in_specs=[
            pl.BlockSpec((H, tp), lambda j, i: (0, j)),    # delta  (resident per j)
            pl.BlockSpec((H, tp), lambda j, i: (0, j)),    # weight (resident per j)
            pl.BlockSpec((tb, tp), lambda j, i: (i, j)),   # adj
        ],
        out_specs=pl.BlockSpec((tb, tp), lambda j, i: (i, j)),
        scratch_shapes=[pltpu.VMEM((1, tp), jnp.float32)],  # head-reduced adjs
        compiler_params=pltpu.CompilerParams(
            # Outer (P) axis is independent -> "parallel" (>=2 tiles only when
            # P is large; v7x megacore).  Inner (batch) axis carries the adjs
            # scratch dependency -> "arbitrary".
            dimension_semantics=("parallel", "arbitrary"),
            vmem_limit_bytes=vmem_limit,
            allow_input_fusion=[True, True, True]),
    )(delta, w_flat, adj_flat)

    out = out_flat[:, :P] if P_pad != P else out_flat
    return jnp.reshape(out, (B, N, N))


if __name__ == "__main__":
    B, N, H = 2, 16, 6
    tau, a = 10.0, 0.7

    key = jax.random.PRNGKey(0)
    k_w, k_g, k_adj = jax.random.split(key, 3)

    # Parameters matching the module's __init__ (stacked over nheads).
    matrix = jnp.ones((H, N, N, 2), jnp.float32)              # torch.ones(N, N, 2)
    weight = jax.random.normal(k_w, (H, N, N), jnp.float32)   # torch.randn(1, N, N)
    # TODO(synk): torch resamples gumbel noise inside every forward; here the
    #             noise is sampled once host-side and passed in (deterministic).
    gumbels = jax.random.gumbel(k_g, (H, N, N, 2), jnp.float32)
    adj = jax.random.uniform(k_adj, (B, N, N), jnp.float32)

    fwd = jax.jit(multi_network_generator, static_argnames=("a", "tau"))
    out = jax.block_until_ready(fwd(adj, matrix, weight, gumbels, a=a, tau=tau))

    # Pure-JAX reference (mirrors the torch forward).
    logits = matrix.reshape(H, N * N, 2)
    noise = gumbels.reshape(H, N * N, 2)
    p0 = jax.nn.softmax((logits + noise) / tau, axis=-1)[..., 0].reshape(H, N, N)
    adjs_ref = jnp.sum(weight * p0, axis=0) / H
    ref = a * jnp.broadcast_to(adjs_ref[None], (B, N, N)) + (1.0 - a) * adj

    assert out.shape == (B, N, N) and out.dtype == jnp.float32
    assert jnp.allclose(out, ref, atol=1e-5, rtol=1e-5), float(
        jnp.max(jnp.abs(out - ref)))
    print("KERNEL_OK")
</pallas_src>

<mosaic_0001>
module attributes {stable_mosaic.version = 11 : i64} {
  func.func @_fused_kernel(%arg0: i32, %arg1: i32, %arg2: memref<6x256xf32, #tpu.memory_space<vmem>>, %arg3: memref<6x256xf32, #tpu.memory_space<vmem>>, %arg4: memref<2x256xf32, #tpu.memory_space<vmem>>, %arg5: memref<2x256xf32, #tpu.memory_space<vmem>>, %arg6: memref<1x256xf32, #tpu.memory_space<vmem>>) attributes {dimension_semantics = [#tpu.dimension_semantics<parallel>, #tpu.dimension_semantics<arbitrary>], iteration_bounds = array<i64: 1, 1>, scalar_prefetch = 0 : i64, scratch_operands = 1 : i64, tpu.core_type = #tpu.core_type<tc>, window_params = [{transform_indices = @transform_0, window_bounds = array<i64: 6, 256>}, {transform_indices = @transform_1, window_bounds = array<i64: 6, 256>}, {transform_indices = @transform_2, window_bounds = array<i64: 2, 256>}, {transform_indices = @transform_3, window_bounds = array<i64: 2, 256>}]} {
    %c0_i32 = arith.constant 0 : i32
    %0 = arith.cmpi eq, %arg1, %c0_i32 : i32
    %1 = arith.extui %0 : i1 to i32
    %c0_i32_0 = arith.constant 0 : i32
    %2 = arith.cmpi ne, %1, %c0_i32_0 : i32
    scf.if %2 {
      %c0_7 = arith.constant 0 : index
      %c0_8 = arith.constant 0 : index
      %12 = vector.load %arg2[%c0_7, %c0_8] : memref<6x256xf32, #tpu.memory_space<vmem>>, vector<6x256xf32>
      %cst_9 = arith.constant 1.000000e-01 : f32
      %13 = vector.broadcast %cst_9 : f32 to vector<6x256xf32>
      %14 = arith.mulf %12, %13 : vector<6x256xf32>
      %15 = arith.negf %14 : vector<6x256xf32>
      %16 = math.exp %15 : vector<6x256xf32>
      %cst_10 = arith.constant 1.000000e+00 : f32
      %17 = vector.broadcast %cst_10 : f32 to vector<6x256xf32>
      %18 = arith.addf %17, %16 : vector<6x256xf32>
      %19 = arith.divf %17, %18 : vector<6x256xf32>
      %c0_11 = arith.constant 0 : index
      %c0_12 = arith.constant 0 : index
      %20 = vector.load %arg3[%c0_11, %c0_12] : memref<6x256xf32, #tpu.memory_space<vmem>>, vector<6x256xf32>
      %21 = arith.mulf %20, %19 : vector<6x256xf32>
      %cst_13 = arith.constant dense<0.000000e+00> : vector<256xf32>
      %22 = vector.multi_reduction <add>, %21, %cst_13 [0] : vector<6x256xf32> to vector<256xf32>
      %23 = vector.shape_cast %22 : vector<256xf32> to vector<1x256xf32>
      %cst_14 = arith.constant 0.166666672 : f32
      %24 = vector.broadcast %cst_14 : f32 to vector<1x256xf32>
      %25 = arith.mulf %23, %24 : vector<1x256xf32>
      %c0_15 = arith.constant 0 : index
      %c0_16 = arith.constant 0 : index
      %26 = vector.load %arg6[%c0_15, %c0_16] : memref<1x256xf32, #tpu.memory_space<vmem>>, vector<1x256xf32>
      tpu.vector_store %arg6[%c0_15, %c0_16], %25 {strides = array<i32>} : memref<1x256xf32, #tpu.memory_space<vmem>>, vector<1x256xf32>,
    } else {
    }
    %c0 = arith.constant 0 : index
    %c0_1 = arith.constant 0 : index
    %3 = vector.load %arg6[%c0, %c0_1] : memref<1x256xf32, #tpu.memory_space<vmem>>, vector<1x256xf32>
    %cst = arith.constant 0.699999988 : f32
    %4 = vector.broadcast %cst : f32 to vector<1x256xf32>
    %5 = arith.mulf %4, %3 : vector<1x256xf32>
    %c0_2 = arith.constant 0 : index
    %c0_3 = arith.constant 0 : index
    %6 = vector.load %arg4[%c0_2, %c0_3] : memref<2x256xf32, #tpu.memory_space<vmem>>, vector<2x256xf32>
    %cst_4 = arith.constant 3.000000e-01 : f32
    %7 = vector.broadcast %cst_4 : f32 to vector<2x256xf32>
    %8 = arith.mulf %7, %6 : vector<2x256xf32>
    %9 = vector.broadcast %5 : vector<1x256xf32> to vector<2x256xf32>
    %10 = arith.addf %9, %8 : vector<2x256xf32>
    %c0_5 = arith.constant 0 : index
    %c0_6 = arith.constant 0 : index
    %11 = vector.load %arg5[%c0_5, %c0_6] : memref<2x256xf32, #tpu.memory_space<vmem>>, vector<2x256xf32>
    tpu.vector_store %arg5[%c0_5, %c0_6], %10 {strides = array<i32>} : memref<2x256xf32, #tpu.memory_space<vmem>>, vector<2x256xf32>,
    return
  }
  func.func @transform_0(%arg0: i32, %arg1: i32) -> (i32, i32) {
    %c0_i32 = arith.constant 0 : i32
    %c0_i32_0 = arith.constant 0 : i32
    return %c0_i32, %arg0 : i32, i32
  }
  func.func @transform_1(%arg0: i32, %arg1: i32) -> (i32, i32) {
    %c0_i32 = arith.constant 0 : i32
    %c0_i32_0 = arith.constant 0 : i32
    return %c0_i32, %arg0 : i32, i32
  }
  func.func @transform_2(%arg0: i32, %arg1: i32) -> (i32, i32) {
    %c0_i32 = arith.constant 0 : i32
    return %arg1, %arg0 : i32, i32
  }
  func.func @transform_3(%arg0: i32, %arg1: i32) -> (i32, i32) {
    %c0_i32 = arith.constant 0 : i32
    return %arg1, %arg0 : i32, i32
  }
}

</mosaic_0001>

<bundles_post_ra>
// kernel: multi_network_generator.2
= control target key start
LH: loop header
LB: loop body
LE: loop exit
PB: predicated region body
PF: predicated region fallthrough
CT: control target
= control target key end

     0   :  { %vm92_vm0 = vcmask 1045504   ;;  %v219_v38 = vmov 1966171168   ;;  %v115_v40 = vlaneseq  ;;  %v220_v59 = vmov 1983009808   ;;  %s282_s0 = inlined_call_operand.vmem [shape: f32[6,256], index: 0, kind: input, shape index: {}]   ;;  %s283_s1 = inlined_call_operand.vmem [shape: f32[2,256], index: 1, kind: input, shape index: {}]   ;;  %s284_s2 = inlined_call_operand.vmem [shape: f32[6,256,2], index: 2, kind: input, shape index: {}]   ;;  %s285_s3 = inlined_call_operand.vmem [shape: f32[6,256,2], index: 3, kind: input, shape index: {}]   ;;  %s286_s4 = inlined_call_operand.vmem [shape: f32[2,256], index: 4, kind: output, shape index: {}]  }
   0x1   :  { %v200_v0 = vld [vmem:[%s284_s2 + $0x10] sm:$0x3f]  ;;  %v180_v2 = vld [vmem:[%s284_s2] sm:$0x3f]  ;;  %v202_v5 = vld [vmem:[%s284_s2 + $0x18] sm:$0x3f]  ;;  %v113_v39 = vunpack.c.l.s4 %v219_v38  ;;  %v149_v60 = vunpack.c.l.s4 %v220_v59 }
   0x2   :  { %v201_v1 = vld [vmem:[%s285_s3 + $0x10] sm:$0x3f]  ;;  %v181_v3 = vld [vmem:[%s285_s3] sm:$0x3f]  ;;  %v203_v6 = vld [vmem:[%s285_s3 + $0x18] sm:$0x3f] }
   0x3   :  { %v183_v4 = vadd.f32 %v201_v1, %v200_v0  ;;  %v182_v7 = vadd.f32 %v181_v3, %v180_v2  ;;  %v204_v8 = vld [vmem:[%s284_s2 + $0x8] sm:$0x3f]  ;;  %v190_v10 = vadd.f32 %v203_v6, %v202_v5  ;;  %v88_v24 = vld [vmem:[%s282_s0] sm:$0x3f]  ;;  %v114_v45 = vunpack.c.0.s8 %v113_v39 }
   0x4   :  { %v205_v9 = vld [vmem:[%s285_s3 + $0x8] sm:$0x3f]  ;;  %v116_v46 = vshrl.u32 %v115_v40, 7  ;;  %vm129_vm1 = vcmp.lt.s32.totalorder %v115_v40, 256  ;;  %v134_v56 = vld [vmem:[%s283_s1] sm:$0xf]  ;;  %v150_v63 = vunpack.c.0.s8 %v149_v60 }
   0x5   :  { %v189_v11 = vadd.f32 %v205_v9, %v204_v8  ;;  %v184_v12 = vsub.f32 %v182_v7, %v183_v4  ;;  %v89_v25 = vld [vmem:[%s282_s0 + $0x8] sm:$0x3f]  ;;  %v135_v61 = vmul.f32 0.3, %v134_v56 }
   0x6   :  { %v117_v51 = vsub.s32 %v114_v45, %v116_v46  ;;  %v139_v58 = vsub.s32 0, %v116_v46  ;;  %v143_v62 = vsub.s32 1, %v116_v46  ;;  %v153_v1 = vsub.s32 %v150_v63, %v116_v46 }
   0x7   :  { %v191_v13 = vsub.f32 %v189_v11, %v190_v10  ;;  %192 = vst [vmem:[#allocation24] sm:$0xff] %v184_v12 }
   0x8   :  { %v154_v3 = vrot.slane %v135_v61, %v153_v1 }
   0x9   :  { %193 = vst [vmem:[#allocation24 + $0x8] sm:$0xff] %v191_v13 }
   0xa   :  { %v155_v4 = vcombine.high %v154_v3, %v154_v3 }
   0xe   :  { %v72_v14 = vld [vmem:[#allocation24] sm:$0x3f] }
   0xf   :  { %v206_v16 = vmul.f32 -0.1, %v72_v14 }
  0x10   :  { %v73_v15 = vld [vmem:[#allocation24 + $0x8] sm:$0x3f] }
  0x11   :  { %v207_v17 = vmul.f32 -0.1, %v73_v15  ;;  %v78_v18 = vmul.f32 1.442695, %v206_v16 }
  0x13   :  { %v80_v19 = vmul.f32 1.442695, %v207_v17  ;;  %211 = vpow2.f32 %v78_v18 }
  0x15   :  { %213 = vpow2.f32 %v80_v19 }
  0x1d   :  { %v212_v20 = vpop.eup %211 }
  0x1e   :  { %v82_v22 = vadd.f32 1.0, %v212_v20 }
  0x1f   :  { %v214_v21 = vpop.eup %213 }
  0x20   :  { %v83_v23 = vadd.f32 1.0, %v214_v21  ;;  %215 = vrcp.f32 %v82_v22 }
  0x22   :  { %217 = vrcp.f32 %v83_v23 }
  0x2a   :  { %v216_v26 = vpop.eup %215 }
  0x2b   :  { %v90_v28 = vmul.f32 %v216_v26, %v88_v24 }
  0x2c   :  { %v218_v27 = vpop.eup %217 }
  0x2d   :  { %v91_v29 = vmul.f32 %v218_v27, %v89_v25  ;;  %v93_v30 = vsel %vm92_vm0, %v90_v28, 0.0 }
  0x2e   :  { %v94_v31 = vrot.slane %v93_v30, 4 }
  0x2f   :  { %v100_v32 = vsel %vm92_vm0, %v91_v29, 0.0 }
  0x30   :  { %v101_v33 = vrot.slane %v100_v32, 4  ;;  %v95_v34 = vadd.f32 %v94_v31, %v93_v30 }
  0x32   :  { %v102_v35 = vadd.f32 %v101_v33, %v100_v32  ;;  %v96_v36 = vrot.slane %v95_v34, 2 }
  0x34   :  { %v103_v37 = vrot.slane %v102_v35, 2  ;;  %v97_v41 = vadd.f32 %v96_v36, %v95_v34 }
  0x36   :  { %v104_v42 = vadd.f32 %v103_v37, %v102_v35  ;;  %v98_v43 = vrot.slane %v97_v41, 1 }
  0x38   :  { %v105_v44 = vrot.slane %v104_v42, 1  ;;  %v99_v47 = vadd.f32 %v98_v43, %v97_v41 }
  0x3a   :  { %v106_v48 = vadd.f32 %v105_v44, %v104_v42  ;;  %v107_v49 = vmul.f32 0.16666667, %v99_v47 }
  0x3c   :  { %v108_v50 = vmul.f32 0.16666667, %v106_v48 }
  0x3e   :  { %v111_v52 = vcombine.low %v107_v49, %v108_v50 }
  0x40   :  { %v118_v53 = vrot.slane %v111_v52, %v117_v51 }
  0x42   :  { %v125_v54 = vrot.slane %v118_v53, %v117_v51 }
  0x44   :  { %131 = vst.msk [vmem:[#allocation2] sm:$0x3] %vm129_vm1, %v125_v54 }
  0x4b   :  { %v132_v55 = vld [vmem:[#allocation2] sm:$0x3] }
  0x4c   :  { %v133_v57 = vmul.f32 0.7, %v132_v55 }
  0x4e   :  { %v140_v0 = vrot.slane %v133_v57, %v139_v58  ;;  %v144_v2 = vrot.slane %v133_v57, %v143_v62 }
  0x50   :  { %v158_v5 = vadd.f32 %v154_v3, %v140_v0  ;;  %v159_v6 = vadd.f32 %v155_v4, %v144_v2 }
  0x52   :  { %v162_v7 = vcombine.low %v158_v5, %v159_v6 }
  0x54   :  { %208 = vst.sshfl [vmem:[%s286_s4] sm:$0x33 pattern:$0x76325410] %v162_v7 }

</bundles_post_ra>
